<compile_context>
chip_gen: v7x
topology: tpu7x:2x2x1
jax: 0.10.0
libtpu: 0.0.40
codegen_flags: <defaults>
</compile_context>

<pallas_src>
import jax
import jax.numpy as jnp
from jax.experimental import pallas as pl
from jax.experimental.pallas import tpu as pltpu

H1, H2 = 128, 256      # hidden sizes fixed by the PyTorch module
LANE = 128             # TPU lane width


def _round_up(x, m):
    return (x + m - 1) // m * m


def mlp_kernel(x_ref, w1_ref, b1_ref, w2_ref, b2_ref, w3_ref, b3_ref, out_ref):
    # fc1 + ReLU: bf16 matmul on the MXU, f32 accumulate, bias+ReLU in f32.
    h1 = jnp.dot(x_ref[...], w1_ref[...], preferred_element_type=jnp.float32)
    h1 = jnp.maximum(h1 + b1_ref[...], 0.0)
    # TODO(synk): dropout is identity here (inference/eval mode, p=0.3 unused).
    # fc2 + ReLU
    h2 = jnp.dot(h1.astype(w2_ref.dtype), w2_ref[...],
                 preferred_element_type=jnp.float32)
    h2 = jnp.maximum(h2 + b2_ref[...], 0.0)
    # fc3 (logits, no activation); output columns are lane-dense (padded to 128).
    h3 = jnp.dot(h2.astype(w3_ref.dtype), w3_ref[...],
                 preferred_element_type=jnp.float32)
    out_ref[...] = (h3 + b3_ref[...]).astype(out_ref.dtype)


def mlp_forward(x, params, *, batch_tile=128):
    """x: [B, C, T] or [B, D].  Returns logits [B, output_size] (f32)."""
    B = x.shape[0]
    x2d = x.reshape(B, -1).astype(jnp.float32)   # PyTorch out.view(B, -1)
    D = x2d.shape[1]
    w1, b1, w2, b2, w3, b3 = params
    out_size = w3.shape[1]

    # ---- lane-dense logits: pad fc3 columns (zeros) up to a multiple of 128.
    out_pad = _round_up(out_size, LANE)
    w3p = jnp.zeros((H2, out_pad), w3.dtype).at[:, :out_size].set(w3)
    b3p = jnp.zeros((1, out_pad), b3.dtype).at[:, :out_size].set(b3)

    # ---- batch tiling: tile is a multiple of 8 sublanes, capped at 128 rows;
    #      pad B so every grid step sees a full tile.
    bt = min(batch_tile, _round_up(B, 8))
    B_pad = _round_up(B, bt)
    if B_pad != B:
        x2d = jnp.pad(x2d, ((0, B_pad - B), (0, 0)))
    grid = (B_pad // bt,)

    # ---- dtypes: bf16 matmul inputs, f32 biases / accumulation.
    x_bf = x2d.astype(jnp.bfloat16)
    w1b, w2b, w3b = (w.astype(jnp.bfloat16) for w in (w1, w2, w3p))
    b1f, b2f, b3f = (b.astype(jnp.float32) for b in (b1, b2, b3p))

    # Weights/biases: constant block index -> DMA'd once, VMEM-resident.
    const = lambda a: pl.BlockSpec(a.shape, lambda i: (0, 0))

    flops = 2 * B_pad * (D * H1 + H1 * H2 + H2 * out_pad)
    bytes_accessed = (
        x_bf.size * 2 + w1b.size * 2 + w2b.size * 2 + w3b.size * 2
        + (b1f.size + b2f.size + b3f.size) * 4
        + B_pad * out_pad * 4
    )

    out = pl.pallas_call(
        mlp_kernel,
        out_shape=jax.ShapeDtypeStruct((B_pad, out_pad), jnp.float32),
        grid=grid,
        in_specs=[
            pl.BlockSpec((bt, D), lambda i: (i, 0)),   # x tile streams
            const(w1b), const(b1f),
            const(w2b), const(b2f),
            const(w3b), const(b3f),
        ],
        out_specs=pl.BlockSpec((bt, out_pad), lambda i: (i, 0)),
        compiler_params=pltpu.CompilerParams(
            dimension_semantics=("parallel",)),
        cost_estimate=pl.CostEstimate(
            flops=flops, transcendentals=0, bytes_accessed=bytes_accessed),
    )(x_bf, w1b, b1f, w2b, b2f, w3b, b3f)

    return out[:B, :out_size]


def init_params(key, input_size, output_size):
    """Deterministic init mimicking nn.Linear (uniform +/- 1/sqrt(fan_in))."""
    def linear(k, fan_in, fan_out):
        kw, kb = jax.random.split(k)
        bound = 1.0 / jnp.sqrt(fan_in)
        w = jax.random.uniform(kw, (fan_in, fan_out), jnp.float32, -bound, bound)
        b = jax.random.uniform(kb, (1, fan_out), jnp.float32, -bound, bound)
        return w, b

    k1, k2, k3 = jax.random.split(key, 3)
    w1, b1 = linear(k1, input_size, H1)
    w2, b2 = linear(k2, H1, H2)
    w3, b3 = linear(k3, H2, output_size)
    return (w1, b1, w2, b2, w3, b3)


def mlp_ref(x, params):
    """Pure-JAX reference matching the kernel's numerics (bf16 matmuls,
    f32 accumulation, f32 bias/ReLU)."""
    w1, b1, w2, b2, w3, b3 = params
    bf = jnp.bfloat16
    out = x.reshape(x.shape[0], -1).astype(jnp.float32)
    out = jnp.maximum(
        jnp.dot(out.astype(bf), w1.astype(bf),
                preferred_element_type=jnp.float32) + b1, 0.0)
    out = jnp.maximum(
        jnp.dot(out.astype(bf), w2.astype(bf),
                preferred_element_type=jnp.float32) + b2, 0.0)
    return jnp.dot(out.astype(bf), w3.astype(bf),
                   preferred_element_type=jnp.float32) + b3


if __name__ == "__main__":
    key = jax.random.PRNGKey(0)
    k_x, k_x2, k_p = jax.random.split(key, 3)

    # Small UCR-like input: batch=8, 1 channel, 64 timesteps -> input_size=64.
    batch, channels, seq_len = 8, 1, 64
    input_size = channels * seq_len
    output_size = 16  # number of classes

    params = init_params(k_p, input_size, output_size)

    # Case 1: batch a multiple of 8.
    x = jax.random.normal(k_x, (batch, channels, seq_len), jnp.float32)
    out = jax.block_until_ready(mlp_forward(x, params))
    ref = mlp_ref(x, params)
    assert out.shape == (batch, output_size), out.shape
    assert jnp.allclose(out, ref, atol=1e-3, rtol=1e-3), "mismatch vs reference"

    # Case 2: ragged batch (exercises wrapper-side B padding).
    x2 = jax.random.normal(k_x2, (10, channels, seq_len), jnp.float32)
    out2 = jax.block_until_ready(mlp_forward(x2, params))
    ref2 = mlp_ref(x2, params)
    assert out2.shape == (10, output_size), out2.shape
    assert jnp.allclose(out2, ref2, atol=1e-3, rtol=1e-3), "mismatch (ragged B)"

    print("KERNEL_OK")
</pallas_src>

<mosaic_0001>
module attributes {stable_mosaic.version = 11 : i64} {
  func.func @mlp_kernel(%arg0: i32, %arg1: memref<8x64xbf16, #tpu.memory_space<vmem>>, %arg2: memref<64x128xbf16, #tpu.memory_space<vmem>>, %arg3: memref<1x128xf32, #tpu.memory_space<vmem>>, %arg4: memref<128x256xbf16, #tpu.memory_space<vmem>>, %arg5: memref<1x256xf32, #tpu.memory_space<vmem>>, %arg6: memref<256x128xbf16, #tpu.memory_space<vmem>>, %arg7: memref<1x128xf32, #tpu.memory_space<vmem>>, %arg8: memref<8x128xf32, #tpu.memory_space<vmem>>) attributes {dimension_semantics = [#tpu.dimension_semantics<parallel>], iteration_bounds = array<i64: 1>, scalar_prefetch = 0 : i64, scratch_operands = 0 : i64, tpu.core_type = #tpu.core_type<tc>, window_params = [{transform_indices = @transform_0, window_bounds = array<i64: 8, 64>}, {pipeline_mode = #tpu.pipeline_mode<synchronous>, transform_indices = @transform_1, window_bounds = array<i64: 64, 128>}, {pipeline_mode = #tpu.pipeline_mode<synchronous>, transform_indices = @transform_2, window_bounds = array<i64: 1, 128>}, {pipeline_mode = #tpu.pipeline_mode<synchronous>, transform_indices = @transform_3, window_bounds = array<i64: 128, 256>}, {pipeline_mode = #tpu.pipeline_mode<synchronous>, transform_indices = @transform_4, window_bounds = array<i64: 1, 256>}, {pipeline_mode = #tpu.pipeline_mode<synchronous>, transform_indices = @transform_5, window_bounds = array<i64: 256, 128>}, {pipeline_mode = #tpu.pipeline_mode<synchronous>, transform_indices = @transform_6, window_bounds = array<i64: 1, 128>}, {transform_indices = @transform_7, window_bounds = array<i64: 8, 128>}]} {
    %c0 = arith.constant 0 : index
    %c0_0 = arith.constant 0 : index
    %0 = vector.load %arg1[%c0, %c0_0] : memref<8x64xbf16, #tpu.memory_space<vmem>>, vector<8x64xbf16>
    %c0_1 = arith.constant 0 : index
    %c0_2 = arith.constant 0 : index
    %1 = vector.load %arg2[%c0_1, %c0_2] : memref<64x128xbf16, #tpu.memory_space<vmem>>, vector<64x128xbf16>
    %cst = arith.constant dense<0.000000e+00> : vector<8x128xf32>
    %2 = tpu.matmul %0, %1, %cst {dimension_numbers = #tpu.dot_dimension_numbers<[1], [0], [0], [1], [0, 0, 1, 1], [], []>} : vector<8x64xbf16>, vector<64x128xbf16>, vector<8x128xf32> -> vector<8x128xf32>
    %c0_3 = arith.constant 0 : index
    %c0_4 = arith.constant 0 : index
    %3 = vector.load %arg3[%c0_3, %c0_4] : memref<1x128xf32, #tpu.memory_space<vmem>>, vector<1x128xf32>
    %4 = vector.broadcast %3 : vector<1x128xf32> to vector<8x128xf32>
    %5 = arith.addf %2, %4 : vector<8x128xf32>
    %cst_5 = arith.constant 0.000000e+00 : f32
    %6 = vector.broadcast %cst_5 : f32 to vector<8x128xf32>
    %7 = arith.maximumf %5, %6 : vector<8x128xf32>
    %8 = arith.truncf %7 : vector<8x128xf32> to vector<8x128xbf16>
    %c0_6 = arith.constant 0 : index
    %c0_7 = arith.constant 0 : index
    %9 = vector.load %arg4[%c0_6, %c0_7] : memref<128x256xbf16, #tpu.memory_space<vmem>>, vector<128x256xbf16>
    %cst_8 = arith.constant dense<0.000000e+00> : vector<8x256xf32>
    %10 = tpu.matmul %8, %9, %cst_8 {dimension_numbers = #tpu.dot_dimension_numbers<[1], [0], [0], [1], [0, 0, 1, 1], [], []>} : vector<8x128xbf16>, vector<128x256xbf16>, vector<8x256xf32> -> vector<8x256xf32>
    %c0_9 = arith.constant 0 : index
    %c0_10 = arith.constant 0 : index
    %11 = vector.load %arg5[%c0_9, %c0_10] : memref<1x256xf32, #tpu.memory_space<vmem>>, vector<1x256xf32>
    %12 = vector.broadcast %11 : vector<1x256xf32> to vector<8x256xf32>
    %13 = arith.addf %10, %12 : vector<8x256xf32>
    %cst_11 = arith.constant 0.000000e+00 : f32
    %14 = vector.broadcast %cst_11 : f32 to vector<8x256xf32>
    %15 = arith.maximumf %13, %14 : vector<8x256xf32>
    %16 = arith.truncf %15 : vector<8x256xf32> to vector<8x256xbf16>
    %c0_12 = arith.constant 0 : index
    %c0_13 = arith.constant 0 : index
    %17 = vector.load %arg6[%c0_12, %c0_13] : memref<256x128xbf16, #tpu.memory_space<vmem>>, vector<256x128xbf16>
    %cst_14 = arith.constant dense<0.000000e+00> : vector<8x128xf32>
    %18 = tpu.matmul %16, %17, %cst_14 {dimension_numbers = #tpu.dot_dimension_numbers<[1], [0], [0], [1], [0, 0, 1, 1], [], []>} : vector<8x256xbf16>, vector<256x128xbf16>, vector<8x128xf32> -> vector<8x128xf32>
    %c0_15 = arith.constant 0 : index
    %c0_16 = arith.constant 0 : index
    %19 = vector.load %arg7[%c0_15, %c0_16] : memref<1x128xf32, #tpu.memory_space<vmem>>, vector<1x128xf32>
    %20 = vector.broadcast %19 : vector<1x128xf32> to vector<8x128xf32>
    %21 = arith.addf %18, %20 : vector<8x128xf32>
    %c0_17 = arith.constant 0 : index
    %c0_18 = arith.constant 0 : index
    %22 = vector.load %arg8[%c0_17, %c0_18] : memref<8x128xf32, #tpu.memory_space<vmem>>, vector<8x128xf32>
    tpu.vector_store %arg8[%c0_17, %c0_18], %21 {strides = array<i32>} : memref<8x128xf32, #tpu.memory_space<vmem>>, vector<8x128xf32>,
    return
  }
  func.func @transform_0(%arg0: i32) -> (i32, i32) {
    %c0_i32 = arith.constant 0 : i32
    %c0_i32_0 = arith.constant 0 : i32
    return %arg0, %c0_i32 : i32, i32
  }
  func.func @transform_1(%arg0: i32) -> (i32, i32) {
    %c0_i32 = arith.constant 0 : i32
    %c0_i32_0 = arith.constant 0 : i32
    %c0_i32_1 = arith.constant 0 : i32
    return %c0_i32, %c0_i32_0 : i32, i32
  }
  func.func @transform_2(%arg0: i32) -> (i32, i32) {
    %c0_i32 = arith.constant 0 : i32
    %c0_i32_0 = arith.constant 0 : i32
    %c0_i32_1 = arith.constant 0 : i32
    return %c0_i32, %c0_i32_0 : i32, i32
  }
  func.func @transform_3(%arg0: i32) -> (i32, i32) {
    %c0_i32 = arith.constant 0 : i32
    %c0_i32_0 = arith.constant 0 : i32
    %c0_i32_1 = arith.constant 0 : i32
    return %c0_i32, %c0_i32_0 : i32, i32
  }
  func.func @transform_4(%arg0: i32) -> (i32, i32) {
    %c0_i32 = arith.constant 0 : i32
    %c0_i32_0 = arith.constant 0 : i32
    %c0_i32_1 = arith.constant 0 : i32
    return %c0_i32, %c0_i32_0 : i32, i32
  }
  func.func @transform_5(%arg0: i32) -> (i32, i32) {
    %c0_i32 = arith.constant 0 : i32
    %c0_i32_0 = arith.constant 0 : i32
    %c0_i32_1 = arith.constant 0 : i32
    return %c0_i32, %c0_i32_0 : i32, i32
  }
  func.func @transform_6(%arg0: i32) -> (i32, i32) {
    %c0_i32 = arith.constant 0 : i32
    %c0_i32_0 = arith.constant 0 : i32
    %c0_i32_1 = arith.constant 0 : i32
    return %c0_i32, %c0_i32_0 : i32, i32
  }
  func.func @transform_7(%arg0: i32) -> (i32, i32) {
    %c0_i32 = arith.constant 0 : i32
    %c0_i32_0 = arith.constant 0 : i32
    return %arg0, %c0_i32 : i32, i32
  }
}

</mosaic_0001>

<bundles_post_ra>
// kernel: tpu_custom_call.1
= control target key start
LH: loop header
LB: loop body
LE: loop exit
PB: predicated region body
PF: predicated region fallthrough
CT: control target
= control target key end

     0   :  { %12 = vsyncpa [#allocation3], 0  ;;  %s892_s0 = inlined_call_operand.hbm [shape: bf16[8,64], index: 0, kind: input, shape index: {}]   ;;  %s893_s1 = inlined_call_operand.hbm [shape: bf16[64,128], index: 1, kind: input, shape index: {}]   ;;  %s894_s2 = inlined_call_operand.vmem [shape: f32[1,128], index: 2, kind: input, shape index: {}]   ;;  %s895_s3 = inlined_call_operand.hbm [shape: bf16[128,256], index: 3, kind: input, shape index: {}]   ;;  %s896_s4 = inlined_call_operand.vmem [shape: f32[1,256], index: 4, kind: input, shape index: {}]   ;;  %s897_s5 = inlined_call_operand.hbm [shape: bf16[256,128], index: 5, kind: input, shape index: {}]   ;;  %s898_s6 = inlined_call_operand.vmem [shape: f32[1,128], index: 6, kind: input, shape index: {}]   ;;  %s899_s7 = inlined_call_operand.hbm [shape: f32[8,128], index: 7, kind: output, shape index: {}]  }
   0x1   :  { %13 = vsyncpa [#allocation6], 0 }
   0x2   :  { %14 = vsyncpa [#allocation9], 0 }
   0x3   :  { %15 = vsyncpa [#allocation4], 0  ;;  %s765_s24 = smov [#allocation5]   ;;  %s647_s28 = scalar_lea.hbm %s893_s1, 512 }
   0x4   :  { %s31_s25 = sshll.u32 %s765_s24, 4  ;;  %p648_p0 = scmp.ne.s32.totalorder %s893_s1, %s647_s28  ;;  %s32_s25 = int_to_ptr.vmem [resolvable:$true] %s31_s25 }
   0x5   :  { %p651_p1 = scmp.lt.u32.totalorder %s647_s28, %s893_s1 }
   0x7   :  { %p653_p2 = pnand %p651_p1, %p648_p0 }
   0x9   :  { %656 = shalt.err (!%p653_p2)
}
   0xa   :  { %s657_s10 = scalar_lea.vmem %s32_s25, 512  ;;  %p662_p4 = scmp.lt.s32.totalorder %s32_s25, %s32_s25 }
   0xb   :  { %p658_p3 = scmp.ne.s32.totalorder %s32_s25, %s657_s10  ;;  %p663_p5 = scmp.lt.s32.totalorder %s657_s10, %s657_s10 }
   0xd   :  { %p664_p6 = por %p663_p5, %p662_p4 }
   0xf   :  { %p665_p7 = pnand %p664_p6, %p658_p3 }
  0x11   :  { %668 = shalt.err (!%p665_p7)
}
  0x12   :  { %s766_s11 = smov 64   ;;  %s767_s12 = smov 4  }
  0x13   :  { %37 = dma.hbm_to_vmem [thread:$0]  %s893_s1, 512, %s32_s25, [#allocation6], %s766_s11, %s766_s11, %s767_s12  }
  0x14   :  { %s768_s15 = smov [#allocation2]   ;;  %s769_s17 = smov [#allocation7]  }
  0x15   :  { %s22_s16 = sshll.u32 %s768_s15, 4  ;;  %s45_s18 = sshll.u32 %s769_s17, 4  ;;  %s23_s16 = int_to_ptr.vmem [resolvable:$true] %s22_s16  ;;  %s46_s18 = int_to_ptr.vmem [resolvable:$true] %s45_s18 }
  0x16   :  { %s669_s21 = scalar_lea.hbm %s892_s0, 64 }
  0x17   :  { %p670_p8 = scmp.ne.s32.totalorder %s892_s0, %s669_s21  ;;  %p673_p9 = scmp.lt.u32.totalorder %s669_s21, %s892_s0 }
  0x19   :  { %p675_p10 = pnand %p673_p9, %p670_p8 }
  0x1b   :  { %678 = shalt.err (!%p675_p10)
}
  0x1c   :  { %s679_s1 = scalar_lea.vmem %s23_s16, 64  ;;  %p684_p12 = scmp.lt.s32.totalorder %s23_s16, %s23_s16 }
  0x1d   :  { %p680_p11 = scmp.ne.s32.totalorder %s23_s16, %s679_s1  ;;  %p685_p13 = scmp.lt.s32.totalorder %s679_s1, %s679_s1 }
  0x1f   :  { %p686_p0 = por %p685_p13, %p684_p12 }
  0x21   :  { %p687_p1 = pnand %p686_p0, %p680_p11 }
  0x23   :  { %690 = shalt.err (!%p687_p1)
}
  0x24   :  { %25 = dma.hbm_to_vmem [thread:$0]  %s892_s0, 64, %s23_s16, [#allocation3]  }
  0x25   :  { %s691_s30 = scalar_lea.hbm %s895_s3, 2048 }
  0x26   :  { %p692_p2 = scmp.ne.s32.totalorder %s895_s3, %s691_s30  ;;  %p695_p3 = scmp.lt.u32.totalorder %s691_s30, %s895_s3 }
  0x28   :  { %p697_p4 = pnand %p695_p3, %p692_p2 }
  0x2a   :  { %700 = shalt.err (!%p697_p4)
}
  0x2b   :  { %s701_s14 = scalar_lea.vmem %s46_s18, 2048  ;;  %p706_p6 = scmp.lt.s32.totalorder %s46_s18, %s46_s18 }
  0x2c   :  { %p702_p5 = scmp.ne.s32.totalorder %s46_s18, %s701_s14  ;;  %p707_p7 = scmp.lt.s32.totalorder %s701_s14, %s701_s14 }
  0x2e   :  { %p708_p8 = por %p707_p7, %p706_p6 }
  0x30   :  { %p709_p9 = pnand %p708_p8, %p702_p5 }
  0x32   :  { %712 = shalt.err (!%p709_p9)
}
  0x33   :  { %s770_s0 = smov 128   ;;  %s771_s15 = smov 8  }
  0x34   :  { %51 = dma.hbm_to_vmem [thread:$0]  %s895_s3, 2048, %s46_s18, [#allocation6], %s770_s0, %s770_s0, %s771_s15  }
  0x35   :  { %s772_s19 = smov [#allocation8]   ;;  %s713_s23 = scalar_lea.hbm %s897_s5, 2048 }
  0x36   :  { %s59_s20 = sshll.u32 %s772_s19, 4  ;;  %p714_p10 = scmp.ne.s32.totalorder %s897_s5, %s713_s23  ;;  %s60_s20 = int_to_ptr.vmem [resolvable:$true] %s59_s20 }
  0x37   :  { %p717_p11 = scmp.lt.u32.totalorder %s713_s23, %s897_s5 }
  0x39   :  { %p719_p12 = pnand %p717_p11, %p714_p10 }
  0x3b   :  { %722 = shalt.err (!%p719_p12)
}
  0x3c   :  { %s723_s27 = scalar_lea.vmem %s60_s20, 2048  ;;  %p728_p0 = scmp.lt.s32.totalorder %s60_s20, %s60_s20 }
  0x3d   :  { %p724_p13 = scmp.ne.s32.totalorder %s60_s20, %s723_s27  ;;  %p729_p1 = scmp.lt.s32.totalorder %s723_s27, %s723_s27 }
  0x3f   :  { %p730_p2 = por %p729_p1, %p728_p0 }
  0x41   :  { %p731_p3 = pnand %p730_p2, %p724_p13 }
  0x43   :  { %734 = shalt.err (!%p731_p3)
}
  0x44   :  { %65 = dma.hbm_to_vmem [thread:$0]  %s897_s5, 2048, %s60_s20, [#allocation9], %s766_s11, %s766_s11, %s767_s12  }
  0x45   :  { %757 = dma.done.wait [#allocation3], 64  }
  0x46   :  { %758 = vsyncadd [#allocation3], 4294967232 }
  0x47   :  { %759 = dma.done.wait [#allocation6], 2560  }
  0x48   :  { %760 = vsyncadd [#allocation6], 4294964736 }
  0x49   :  { %761 = dma.done.wait [#allocation9], 2048  }
  0x4a   :  { %762 = vsyncadd [#allocation9], 4294965248  ;;  %v773_v0 = vmov 0.0   ;;  %vm774_vm0 = vmmov 0   ;;  %v603_v1 = vld [vmem:[#allocation5] sm:$0xff]   ;;  %v604_v2 = vld [vmem:[#allocation5 + $0x8] sm:$0xff]   ;;  %v185_v47 = vlaneseq }
  0x4b   :  { %579 = vmatprep.subr.bf16.mxu0 %v773_v0  ;;  %587 = vmatprep.mubr.msk.bf16.mxu0 %vm774_vm0, %v773_v0  ;;  %v607_v3 = vld [vmem:[#allocation7 + $0x4] ss:$8 sps:$4 sm:$0xff]   ;;  %v609_v4 = vld [vmem:[#allocation7] ss:$8 sps:$4 sm:$0xff]   ;;  %v605_v5 = vld [vmem:[#allocation5 + $0x10] sm:$0xff]   ;;  %vm121_vm1 = vcmask 523264  }
  0x4c   :  { %580 = vmatpush3.bf16.msra.mxu0 %v603_v1  ;;  %v610_v6 = vld [vmem:[#allocation7 + $0x14] ss:$8 sps:$4 sm:$0xff]   ;;  %275 = vmatprep.subr.bf16.mxu1 %v607_v3  ;;  %v612_v7 = vld [vmem:[#allocation7 + $0x10] ss:$8 sps:$4 sm:$0xff]   ;;  %v613_v8 = vld [vmem:[#allocation7 + $0x24] ss:$8 sps:$4 sm:$0xff]  }
  0x4d   :  { %581 = vmatprep.subr.bf16.mxu0 %v773_v0  ;;  %276 = vmatpush1.bf16.msra.mxu1 %v609_v4  ;;  %v606_v9 = vld [vmem:[#allocation5 + $0x18] sm:$0xff]   ;;  %v615_v10 = vld [vmem:[#allocation7 + $0x20] ss:$8 sps:$4 sm:$0xff]   ;;  %v619_v14 = vld [vmem:[#allocation7 + $0x44] ss:$8 sps:$4 sm:$0xff]   ;;  %v775_v22 = vmov 0  }
  0x4e   :  { %277 = vmatprep.subr.bf16.mxu1 %v610_v6  ;;  %v81_v11 = vld [vmem:[#allocation2] sm:$0xf]  ;;  %v618_v13 = vld [vmem:[#allocation7 + $0x30] ss:$8 sps:$4 sm:$0xff]   ;;  %v621_v15 = vld [vmem:[#allocation7 + $0x40] ss:$8 sps:$4 sm:$0xff]   ;;  %307 = vmatprep.mubr.bf16.mxu1 %v775_v22 }
  0x4f   :  { %v616_v12 = vld [vmem:[#allocation7 + $0x34] ss:$8 sps:$4 sm:$0xff]   ;;  %v624_v17 = vld [vmem:[#allocation7 + $0x50] ss:$8 sps:$4 sm:$0xff]   ;;  %v625_v18 = vld [vmem:[#allocation7 + $0x64] ss:$8 sps:$4 sm:$0xff]  }
  0x50   :  { %582 = vmatpush3.bf16.msra.mxu0 %v604_v2  ;;  %v622_v16 = vld [vmem:[#allocation7 + $0x54] ss:$8 sps:$4 sm:$0xff]   ;;  %v627_v19 = vld [vmem:[#allocation7 + $0x60] ss:$8 sps:$4 sm:$0xff]   ;;  %v630_v21 = vld [vmem:[#allocation7 + $0x70] ss:$8 sps:$4 sm:$0xff]  }
  0x51   :  { %583 = vmatprep.subr.bf16.mxu0 %v773_v0  ;;  %278 = vmatpush1.bf16.msra.mxu1 %v612_v7  ;;  %v628_v20 = vld [vmem:[#allocation7 + $0x74] ss:$8 sps:$4 sm:$0xff]   ;;  %v631_v23 = vld [vmem:[#allocation8 + $0x40] sm:$0xff]   ;;  %v633_v25 = vld [vmem:[#allocation8 + $0x48] sm:$0xff]   ;;  %v186_v48 = vshrl.u32 %v185_v47, 7 }
  0x52   :  { %279 = vmatprep.subr.bf16.mxu1 %v613_v8  ;;  %v632_v24 = vld [vmem:[#allocation8] sm:$0xff]   ;;  %v634_v26 = vld [vmem:[#allocation8 + $0x8] sm:$0xff]   ;;  %v635_v27 = vld [vmem:[#allocation8 + $0x50] sm:$0xff]  }
  0x53   :  { %v636_v28 = vld [vmem:[#allocation8 + $0x10] sm:$0xff]   ;;  %v637_v29 = vld [vmem:[#allocation8 + $0x58] sm:$0xff]   ;;  %v639_v31 = vld [vmem:[#allocation8 + $0x60] sm:$0xff]   ;;  %v187_v49 = vsub.s32 0, %v186_v48  ;;  %v191_v51 = vsub.s32 1, %v186_v48 }
  0x54   :  { %584 = vmatpush3.bf16.msra.mxu0 %v605_v5  ;;  %v638_v30 = vld [vmem:[#allocation8 + $0x18] sm:$0xff]   ;;  %v640_v32 = vld [vmem:[#allocation8 + $0x20] sm:$0xff]   ;;  %v641_v33 = vld [vmem:[#allocation8 + $0x68] sm:$0xff]  }
  0x55   :  { %585 = vmatprep.subr.bf16.mxu0 %v773_v0  ;;  %280 = vmatpush1.bf16.msra.mxu1 %v615_v10  ;;  %v642_v34 = vld [vmem:[#allocation8 + $0x28] sm:$0xff]   ;;  %v513_v35 = vld [vmem:[%s894_s2] ss:$0 sm:$0xff]  ;;  %v643_v43 = vld [vmem:[#allocation8 + $0x70] sm:$0xff]  }
  0x56   :  { %281 = vmatprep.subr.bf16.mxu1 %v616_v12  ;;  %v644_v44 = vld [vmem:[#allocation8 + $0x30] sm:$0xff]   ;;  %v645_v45 = vld [vmem:[#allocation8 + $0x78] sm:$0xff]  }
  0x57   :  { %v646_v46 = vld [vmem:[#allocation8 + $0x38] sm:$0xff]  }
  0x58   :  { %586 = vmatpush3.bf16.msra.mxu0 %v606_v9  ;;  %v183_v50 = vld [vmem:[%s896_s4] sm:$0x3]  ;;  %s776_s4 = smov [#allocation10]  }
  0x59   :  { %282 = vmatpush1.bf16.msra.mxu1 %v618_v13  ;;  %557 = vmatprep.subr.bf16.mxu0 %v631_v23  ;;  %v188_v52 = vrot.slane %v183_v50, %v187_v49  ;;  %v192_v53 = vrot.slane %v183_v50, %v191_v51  ;;  %v535_v1 = vld [vmem:[%s898_s6] ss:$0 sm:$0xff]  ;;  %s502_s30 = sshll.u32 %s776_s4, 4  ;;  %s503_s30 = int_to_ptr.vmem [resolvable:$true] %s502_s30 }
  0x5a   :  { %283 = vmatprep.subr.bf16.mxu1 %v619_v14  ;;  %s735_s8 = scalar_lea.vmem %s503_s30, 128  ;;  %p740_p5 = scmp.lt.s32.totalorder %s503_s30, %s503_s30 }
  0x5b   :  { %588 = vmatmul.mubr.msk.bf16.vlgmr.msra.gmra.mrb[0].mxu0 %vm121_vm1, %v81_v11  ;;  %p736_p4 = scmp.ne.s32.totalorder %s503_s30, %s735_s8  ;;  %p741_p6 = scmp.lt.s32.totalorder %s735_s8, %s735_s8 }
  0x5c   :  { %558 = vmatpush3.bf16.msra.mxu0 %v632_v24 }
  0x5d   :  { %284 = vmatpush1.bf16.msra.mxu1 %v621_v15  ;;  %559 = vmatprep.subr.bf16.mxu0 %v633_v25  ;;  %p742_p7 = por %p741_p6, %p740_p5 }
  0x5e   :  { %285 = vmatprep.subr.bf16.mxu1 %v622_v16 }
  0x5f   :  { %p743_p8 = pnand %p742_p7, %p736_p4 }
  0x60   :  { %560 = vmatpush3.bf16.msra.mxu0 %v634_v26 }
  0x61   :  { %286 = vmatpush1.bf16.msra.mxu1 %v624_v17  ;;  %561 = vmatprep.subr.bf16.mxu0 %v635_v27 }
  0x62   :  { %287 = vmatprep.subr.bf16.mxu1 %v625_v18 }
  0x64   :  { %562 = vmatpush3.bf16.msra.mxu0 %v636_v28 }
  0x65   :  { %288 = vmatpush1.bf16.msra.mxu1 %v627_v19  ;;  %563 = vmatprep.subr.bf16.mxu0 %v637_v29 }
  0x66   :  { %289 = vmatprep.subr.bf16.mxu1 %v628_v20 }
  0x68   :  { %564 = vmatpush3.bf16.msra.mxu0 %v638_v30 }
  0x69   :  { %290 = vmatpush1.bf16.msra.mxu1 %v630_v21  ;;  %565 = vmatprep.subr.bf16.mxu0 %v639_v31 }
  0x6c   :  { %566 = vmatpush3.bf16.msra.mxu0 %v640_v32 }
  0x6d   :  { %567 = vmatprep.subr.bf16.mxu0 %v641_v33 }
  0x70   :  { %568 = vmatpush3.bf16.msra.mxu0 %v642_v34 }
  0x71   :  { %569 = vmatprep.subr.bf16.mxu0 %v643_v43 }
  0x74   :  { %570 = vmatpush3.bf16.msra.mxu0 %v644_v44 }
  0x75   :  { %571 = vmatprep.subr.bf16.mxu0 %v645_v45 }
  0x78   :  { %572 = vmatpush3.bf16.msra.mxu0 %v646_v46 }
 0x12e   :  { %v159_v36 = vpop.f32.mrb[0].mxu0 }
 0x12f   :  { %v160_v37 = vadd.f32 %v513_v35, %v159_v36  ;;  %v589_v38 = vpop.f32.mrb[1].mxu0 }
 0x130   :  { %v162_v39 = vpop.f32.mrb[2].mxu0 }
 0x131   :  { %v165_v40 = vmax.f32 %v160_v37, 0.0  ;;  %v590_v41 = vpop.f32.mrb[3].mxu0 }
 0x133   :  { %v166_v42 = vpack.c.bf16 %v165_v40, %v165_v40 }
 0x135   :  { %308 = vmatmul.mubr.bf16.vlgmr.msra.gmra.mrb[0].mxu1 %v166_v42 }
 0x208   :  { %v309_v54 = vpop.f32.mrb[0].mxu1 }
 0x209   :  { %v310_v55 = vadd.f32 %v309_v54, %v188_v52  ;;  %v311_v56 = vpop.f32.mrb[1].mxu1 }
 0x20a   :  { %v312_v57 = vadd.f32 %v311_v56, %v192_v53  ;;  %v313_v58 = vpop.f32.mrb[2].mxu1 }
 0x20b   :  { %v316_v59 = vmax.f32 %v310_v55, 0.0  ;;  %v314_v60 = vpop.f32.mrb[3].mxu1 }
 0x20c   :  { %v317_v61 = vmax.f32 %v312_v57, 0.0 }
 0x20d   :  { %v318_v63 = vpack.c.bf16 %v316_v59, %v316_v59 }
 0x20e   :  { %v319_v62 = vpack.c.bf16 %v317_v61, %v317_v61 }
 0x210   :  { %487 = vmatprep.mubr.bf16.mxu0 %v319_v62 }
 0x211   :  { %488 = vmatmul.mubr.bf16.vlgmr.msra.gmra.mrb[4].mxu0 %v318_v63 }
 0x2e4   :  { %v573_v0 = vpop.f32.mrb[4].mxu0 }
 0x2e5   :  { %v574_v2 = vpop.f32.mrb[5].mxu0 }
 0x2e6   :  { %v575_v3 = vadd.f32 %v574_v2, %v573_v0  ;;  %v576_v4 = vpop.f32.mrb[6].mxu0 }
 0x2e7   :  { %v577_v5 = vpop.f32.mrb[7].mxu0 }
 0x2e8   :  { %v490_v6 = vadd.f32 %v575_v3, %v535_v1 }
 0x2ea   :  { %495 = vst [vmem:[#allocation10] sm:$0xff] %v490_v6 }
 0x2eb   :  { %746 = shalt.err (!%p743_p8)
}
 0x2ec   :  { %s747_s6 = scalar_lea.hbm %s899_s7, 128 }
 0x2ed   :  { %p748_p9 = scmp.ne.s32.totalorder %s899_s7, %s747_s6  ;;  %p751_p10 = scmp.lt.u32.totalorder %s747_s6, %s899_s7 }
 0x2ef   :  { %p753_p11 = pnand %p751_p10, %p748_p9 }
 0x2f1   :  { %756 = shalt.err (!%p753_p11)
}
 0x2f2   :  { %505 = dma.vmem_to_hbm [thread:$0]  %s503_s30, 128, %s899_s7, [#allocation4]  }
 0x2f3   :  { %763 = dma.done.wait [#allocation4], 128  }
 0x2f4   :  { %764 = vsyncadd [#allocation4], 4294967168 }
 0x2f5   :  { %509 = vsyncpa [#allocation3], 1 }
 0x2f6   :  { %510 = vsyncpa [#allocation6], 1 }
 0x2f7   :  { %511 = vsyncpa [#allocation9], 1 }
 0x2f8   :  { %512 = vsyncpa [#allocation4], 1 }

</bundles_post_ra>
